<compile_context>
chip_gen: v7x
topology: tpu7x:2x2x1
jax: 0.10.0
libtpu: 0.0.40
codegen_flags: <defaults>
</compile_context>

<pallas_src>
import jax
import jax.numpy as jnp
from jax.experimental import pallas as pl
from jax.experimental.pallas import tpu as pltpu

HIDDEN_LAYER_1 = 64
HIDDEN_LAYER_2 = 64


def _round_up(x, m):
    return ((x + m - 1) // m) * m


def critic_kernel(x_ref, w_in_ref, b1_ref, w2s_ref, b2_ref, w3t_ref, b3_ref,
                  o_ref):
    bf = jnp.bfloat16

    # Streamed activations arrive as f32; cast to bf16 on the VPU (free filler
    # under the MXU) right before the dot.
    x = x_ref[...].astype(bf)                                     # (tm, sd+ad)

    # Fused fc1 + action-half-of-fc2: one K=(sd+ad), N=128 MXU pass against the
    # block-diagonal weight [[W1, 0], [0, W2a]].
    y = jnp.dot(x, w_in_ref[...], preferred_element_type=jnp.float32)  # (tm,128)
    h1 = jnp.maximum(y[:, :HIDDEN_LAYER_1] + b1_ref[...], 0.0)         # (tm,64)
    act_part = y[:, HIDDEN_LAYER_1:]                                   # a @ W2a

    # fc2 hidden-half + relu (bias add / relu stay f32 for v5e VPU).
    h2 = jnp.dot(h1.astype(bf), w2s_ref[...],
                 preferred_element_type=jnp.float32)
    h2 = jnp.maximum(h2 + act_part + b2_ref[...], 0.0)                 # (tm,64)

    # Output layer (64 -> 1), computed lane-dense as a (1, tm) row:
    # q_row[0, m] = sum_k w3t[0, k] * h2[m, k].
    # TODO(synk): per review, audit bundle dump for a hidden XLU transpose of
    # h2 here; if it scales with tm, switch to a VPU mul + lane reduce.
    q_row = jax.lax.dot_general(
        w3t_ref[...], h2.astype(bf),
        dimension_numbers=(((1,), (1,)), ((), ())),
        preferred_element_type=jnp.float32)
    o_ref[...] = (q_row + b3_ref[...]).astype(o_ref.dtype)


def critic_forward(states, actions, params, *, block_rows=2048, min_tiles=2):
    """Tiled Pallas forward. Returns f32 Q-values of shape (batch, 1)."""
    w1, b1, w2s, w2a, b2, w3t, b3 = params
    batch, state_dim = states.shape
    action_dim = actions.shape[1]
    feat = state_dim + action_dim
    n_aug = HIDDEN_LAYER_1 + HIDDEN_LAYER_2        # 128 (fills the MXU width)

    # One packed f32 activation stream (no bf16 cast, no batch padding).  The
    # concat is a single cheap XLA copy; it removes the separate low-lane-util
    # (tm, action_dim) DMA stream and enables the fused K=feat/N=128 matmul.
    f32 = jnp.float32
    x = jnp.concatenate([states.astype(f32), actions.astype(f32)], axis=1)

    # Block-diagonal augmented weight [[W1, 0], [0, W2a]]  -> (feat, 128) bf16.
    bf = jnp.bfloat16
    w_in = jnp.zeros((feat, n_aug), f32)
    w_in = w_in.at[:state_dim, :HIDDEN_LAYER_1].set(w1)
    w_in = w_in.at[state_dim:, HIDDEN_LAYER_1:].set(w2a)
    w_in = w_in.astype(bf)
    w2s_b = w2s.astype(bf)
    w3t_b = w3t.astype(bf)

    # ---- batch tile selection ----------------------------------------------
    # Small batches: one full-batch tile (block == full dim, no alignment
    # constraint).  Larger batches: >= min_tiles tiles (so v7x's 2 TCs both get
    # work), each a multiple of 128 (lane-dense output constraint), capped by
    # block_rows (2048 default keeps VMEM use tiny on all generations).
    if batch <= 256:
        tm, num_tiles = batch, 1
    else:
        br = max(128, _round_up(block_rows, 128))
        tm = min(br, _round_up(pl.cdiv(batch, max(min_tiles, 1)), 128))
        num_tiles = pl.cdiv(batch, tm)

    flops = 2 * batch * (feat * n_aug
                         + HIDDEN_LAYER_1 * HIDDEN_LAYER_2
                         + HIDDEN_LAYER_2)
    param_bytes = sum(int(a.size) * a.dtype.itemsize
                      for a in (w_in, b1, w2s_b, b2, w3t_b, b3))
    bytes_accessed = batch * feat * 4 + batch * 4 + param_bytes

    grid_spec = pltpu.PrefetchScalarGridSpec(
        num_scalar_prefetch=0,
        grid=(num_tiles,),
        in_specs=[
            # streamed per-tile activations (f32; uneven last block is masked)
            pl.BlockSpec((tm, feat), lambda i: (i, 0)),
            # parameters: constant block index -> fetched once, VMEM-resident
            pl.BlockSpec((feat, n_aug), lambda i: (0, 0)),            # W_aug
            pl.BlockSpec((1, HIDDEN_LAYER_1), lambda i: (0, 0)),      # b1
            pl.BlockSpec((HIDDEN_LAYER_1, HIDDEN_LAYER_2),
                         lambda i: (0, 0)),                           # W2s
            pl.BlockSpec((1, HIDDEN_LAYER_2), lambda i: (0, 0)),      # b2
            pl.BlockSpec((1, HIDDEN_LAYER_2), lambda i: (0, 0)),      # w3 row
            pl.BlockSpec((1, 1), lambda i: (0, 0)),                   # b3
        ],
        # Lane-dense Q output: tile i writes columns [i*tm, (i+1)*tm); the
        # boundary block's out-of-range columns are discarded by Pallas.
        out_specs=pl.BlockSpec((1, tm), lambda i: (0, i)),
    )

    q_rows = pl.pallas_call(
        critic_kernel,
        out_shape=jax.ShapeDtypeStruct((1, batch), jnp.float32),
        grid_spec=grid_spec,
        compiler_params=pltpu.CompilerParams(
            dimension_semantics=("parallel",)),
        cost_estimate=pl.CostEstimate(
            flops=flops, transcendentals=0, bytes_accessed=bytes_accessed),
    )(x, w_in, b1, w2s_b, b2, w3t_b, b3)

    # (1, batch) lane-dense row -> (batch, 1) column (element order preserved).
    return q_rows.reshape(batch, 1)


def init_params(key, state_dim, action_dim):
    """Deterministic init mirroring the PyTorch module's __init__:
    fc1/fc2 use fan-in uniform (hidden_layer_init); output weights
    uniform(-3e-3, 3e-3); output bias default fan-in uniform."""
    ks = jax.random.split(key, 7)

    def fan_in_uniform(k, shape, fan_in):
        lim = 1.0 / jnp.sqrt(jnp.float32(fan_in))
        return jax.random.uniform(k, shape, jnp.float32, -lim, lim)

    # fc1: state_dim -> 64   (stored [in, out])
    w1 = fan_in_uniform(ks[0], (state_dim, HIDDEN_LAYER_1), state_dim)
    b1 = fan_in_uniform(ks[1], (1, HIDDEN_LAYER_1), state_dim)

    # fc2: (64 + action_dim) -> 64, split into the h1-part and the action-part
    fan_in2 = HIDDEN_LAYER_1 + action_dim
    w2s = fan_in_uniform(ks[2], (HIDDEN_LAYER_1, HIDDEN_LAYER_2), fan_in2)
    w2a = fan_in_uniform(ks[3], (action_dim, HIDDEN_LAYER_2), fan_in2)
    b2 = fan_in_uniform(ks[4], (1, HIDDEN_LAYER_2), fan_in2)

    # output layer: 64 -> 1. Weight stored as a row (1, 64) == PyTorch layout.
    w3t = jax.random.uniform(ks[5], (1, HIDDEN_LAYER_2), jnp.float32,
                             -0.003, 0.003)
    b3 = fan_in_uniform(ks[6], (1, 1), HIDDEN_LAYER_2)

    return (w1, b1, w2s, w2a, b2, w3t, b3)


def critic_reference(states, actions, params):
    """Plain-JAX reference with the same bf16-operand / f32-accumulate
    numerics as the kernel (same math as the PyTorch forward)."""
    w1, b1, w2s, w2a, b2, w3t, b3 = params
    bf = jnp.bfloat16

    def mm(x, w):
        return jnp.dot(x.astype(bf), w.astype(bf),
                       preferred_element_type=jnp.float32)

    h1 = jax.nn.relu(mm(states, w1) + b1)
    h2 = jax.nn.relu(mm(h1, w2s) + mm(actions, w2a) + b2)
    return mm(h2, w3t.T) + b3


if __name__ == "__main__":
    key = jax.random.PRNGKey(0)
    k_s1, k_a1, k_s2, k_a2, k_p = jax.random.split(key, 5)

    state_dim, action_dim = 16, 4
    params = init_params(k_p, state_dim, action_dim)

    # Case 1: multi-tile path — batch=384 -> tm=256, 2 grid steps, uneven
    # (masked) boundary block, lane-dense output writeback.
    batch1 = 384
    states1 = jax.random.normal(k_s1, (batch1, state_dim), jnp.float32)
    actions1 = jax.random.normal(k_a1, (batch1, action_dim), jnp.float32)
    out1 = jax.block_until_ready(critic_forward(states1, actions1, params))
    ref1 = critic_reference(states1, actions1, params)
    assert out1.shape == (batch1, 1)
    assert jnp.allclose(out1, ref1, atol=1e-4, rtol=1e-4), \
        "Pallas kernel mismatch vs reference (multi-tile)"

    # Case 2: small odd batch -> single full-batch tile (full-dim blocks).
    batch2 = 37
    states2 = jax.random.normal(k_s2, (batch2, state_dim), jnp.float32)
    actions2 = jax.random.normal(k_a2, (batch2, action_dim), jnp.float32)
    out2 = jax.block_until_ready(critic_forward(states2, actions2, params))
    ref2 = critic_reference(states2, actions2, params)
    assert out2.shape == (batch2, 1)
    assert jnp.allclose(out2, ref2, atol=1e-4, rtol=1e-4), \
        "Pallas kernel mismatch vs reference (single tile)"

    print("KERNEL_OK")
</pallas_src>

<mosaic_0001>
module attributes {stable_mosaic.version = 11 : i64} {
  func.func @critic_kernel(%arg0: i32, %arg1: memref<256x20xf32, #tpu.memory_space<vmem>>, %arg2: memref<20x128xbf16, #tpu.memory_space<vmem>>, %arg3: memref<1x64xf32, #tpu.memory_space<vmem>>, %arg4: memref<64x64xbf16, #tpu.memory_space<vmem>>, %arg5: memref<1x64xf32, #tpu.memory_space<vmem>>, %arg6: memref<1x64xbf16, #tpu.memory_space<vmem>>, %arg7: memref<1x1xf32, #tpu.memory_space<vmem>>, %arg8: memref<1x256xf32, #tpu.memory_space<vmem>>) attributes {dimension_semantics = [#tpu.dimension_semantics<parallel>], iteration_bounds = array<i64: 2>, scalar_prefetch = 0 : i64, scratch_operands = 0 : i64, tpu.core_type = #tpu.core_type<tc>, window_params = [{transform_indices = @transform_0, window_bounds = array<i64: 256, 20>}, {pipeline_mode = #tpu.pipeline_mode<synchronous>, transform_indices = @transform_1, window_bounds = array<i64: 20, 128>}, {pipeline_mode = #tpu.pipeline_mode<synchronous>, transform_indices = @transform_2, window_bounds = array<i64: 1, 64>}, {pipeline_mode = #tpu.pipeline_mode<synchronous>, transform_indices = @transform_3, window_bounds = array<i64: 64, 64>}, {pipeline_mode = #tpu.pipeline_mode<synchronous>, transform_indices = @transform_4, window_bounds = array<i64: 1, 64>}, {pipeline_mode = #tpu.pipeline_mode<synchronous>, transform_indices = @transform_5, window_bounds = array<i64: 1, 64>}, {pipeline_mode = #tpu.pipeline_mode<synchronous>, transform_indices = @transform_6, window_bounds = array<i64: 1, 1>}, {transform_indices = @transform_7, window_bounds = array<i64: 1, 256>}]} {
    %c0 = arith.constant 0 : index
    %c0_0 = arith.constant 0 : index
    %0 = vector.load %arg1[%c0, %c0_0] : memref<256x20xf32, #tpu.memory_space<vmem>>, vector<256x20xf32>
    %1 = arith.truncf %0 : vector<256x20xf32> to vector<256x20xbf16>
    %c0_1 = arith.constant 0 : index
    %c0_2 = arith.constant 0 : index
    %2 = vector.load %arg2[%c0_1, %c0_2] : memref<20x128xbf16, #tpu.memory_space<vmem>>, vector<20x128xbf16>
    %cst = arith.constant dense<0.000000e+00> : vector<256x128xf32>
    %3 = tpu.matmul %1, %2, %cst {dimension_numbers = #tpu.dot_dimension_numbers<[1], [0], [0], [1], [0, 0, 1, 1], [], []>} : vector<256x20xbf16>, vector<20x128xbf16>, vector<256x128xf32> -> vector<256x128xf32>
    %4 = vector.extract_strided_slice %3 {offsets = [0, 0], sizes = [256, 64], strides = [1, 1]} : vector<256x128xf32> to vector<256x64xf32>
    %c0_3 = arith.constant 0 : index
    %c0_4 = arith.constant 0 : index
    %5 = vector.load %arg3[%c0_3, %c0_4] : memref<1x64xf32, #tpu.memory_space<vmem>>, vector<1x64xf32>
    %6 = vector.broadcast %5 : vector<1x64xf32> to vector<256x64xf32>
    %7 = arith.addf %4, %6 : vector<256x64xf32>
    %cst_5 = arith.constant 0.000000e+00 : f32
    %8 = vector.broadcast %cst_5 : f32 to vector<256x64xf32>
    %9 = arith.maximumf %7, %8 : vector<256x64xf32>
    %10 = vector.extract_strided_slice %3 {offsets = [0, 64], sizes = [256, 64], strides = [1, 1]} : vector<256x128xf32> to vector<256x64xf32>
    %11 = arith.truncf %9 : vector<256x64xf32> to vector<256x64xbf16>
    %c0_6 = arith.constant 0 : index
    %c0_7 = arith.constant 0 : index
    %12 = vector.load %arg4[%c0_6, %c0_7] : memref<64x64xbf16, #tpu.memory_space<vmem>>, vector<64x64xbf16>
    %cst_8 = arith.constant dense<0.000000e+00> : vector<256x64xf32>
    %13 = tpu.matmul %11, %12, %cst_8 {dimension_numbers = #tpu.dot_dimension_numbers<[1], [0], [0], [1], [0, 0, 1, 1], [], []>} : vector<256x64xbf16>, vector<64x64xbf16>, vector<256x64xf32> -> vector<256x64xf32>
    %14 = arith.addf %13, %10 : vector<256x64xf32>
    %c0_9 = arith.constant 0 : index
    %c0_10 = arith.constant 0 : index
    %15 = vector.load %arg5[%c0_9, %c0_10] : memref<1x64xf32, #tpu.memory_space<vmem>>, vector<1x64xf32>
    %16 = vector.broadcast %15 : vector<1x64xf32> to vector<256x64xf32>
    %17 = arith.addf %14, %16 : vector<256x64xf32>
    %cst_11 = arith.constant 0.000000e+00 : f32
    %18 = vector.broadcast %cst_11 : f32 to vector<256x64xf32>
    %19 = arith.maximumf %17, %18 : vector<256x64xf32>
    %c0_12 = arith.constant 0 : index
    %c0_13 = arith.constant 0 : index
    %20 = vector.load %arg6[%c0_12, %c0_13] : memref<1x64xbf16, #tpu.memory_space<vmem>>, vector<1x64xbf16>
    %21 = arith.truncf %19 : vector<256x64xf32> to vector<256x64xbf16>
    %cst_14 = arith.constant dense<0.000000e+00> : vector<1x256xf32>
    %22 = tpu.matmul %20, %21, %cst_14 {dimension_numbers = #tpu.dot_dimension_numbers<[1], [1], [0], [0], [0, 0, 1, 0], [], []>} : vector<1x64xbf16>, vector<256x64xbf16>, vector<1x256xf32> -> vector<1x256xf32>
    %c0_15 = arith.constant 0 : index
    %c0_16 = arith.constant 0 : index
    %23 = vector.load %arg7[%c0_15, %c0_16] : memref<1x1xf32, #tpu.memory_space<vmem>>, vector<1x1xf32>
    %24 = vector.broadcast %23 : vector<1x1xf32> to vector<1x256xf32>
    %25 = arith.addf %22, %24 : vector<1x256xf32>
    %c0_17 = arith.constant 0 : index
    %c0_18 = arith.constant 0 : index
    %26 = vector.load %arg8[%c0_17, %c0_18] : memref<1x256xf32, #tpu.memory_space<vmem>>, vector<1x256xf32>
    tpu.vector_store %arg8[%c0_17, %c0_18], %25 {strides = array<i32>} : memref<1x256xf32, #tpu.memory_space<vmem>>, vector<1x256xf32>,
    return
  }
  func.func @transform_0(%arg0: i32) -> (i32, i32) {
    %c0_i32 = arith.constant 0 : i32
    %c0_i32_0 = arith.constant 0 : i32
    return %arg0, %c0_i32 : i32, i32
  }
  func.func @transform_1(%arg0: i32) -> (i32, i32) {
    %c0_i32 = arith.constant 0 : i32
    %c0_i32_0 = arith.constant 0 : i32
    %c0_i32_1 = arith.constant 0 : i32
    return %c0_i32, %c0_i32_0 : i32, i32
  }
  func.func @transform_2(%arg0: i32) -> (i32, i32) {
    %c0_i32 = arith.constant 0 : i32
    %c0_i32_0 = arith.constant 0 : i32
    %c0_i32_1 = arith.constant 0 : i32
    return %c0_i32, %c0_i32_0 : i32, i32
  }
  func.func @transform_3(%arg0: i32) -> (i32, i32) {
    %c0_i32 = arith.constant 0 : i32
    %c0_i32_0 = arith.constant 0 : i32
    %c0_i32_1 = arith.constant 0 : i32
    return %c0_i32, %c0_i32_0 : i32, i32
  }
  func.func @transform_4(%arg0: i32) -> (i32, i32) {
    %c0_i32 = arith.constant 0 : i32
    %c0_i32_0 = arith.constant 0 : i32
    %c0_i32_1 = arith.constant 0 : i32
    return %c0_i32, %c0_i32_0 : i32, i32
  }
  func.func @transform_5(%arg0: i32) -> (i32, i32) {
    %c0_i32 = arith.constant 0 : i32
    %c0_i32_0 = arith.constant 0 : i32
    %c0_i32_1 = arith.constant 0 : i32
    return %c0_i32, %c0_i32_0 : i32, i32
  }
  func.func @transform_6(%arg0: i32) -> (i32, i32) {
    %c0_i32 = arith.constant 0 : i32
    %c0_i32_0 = arith.constant 0 : i32
    %c0_i32_1 = arith.constant 0 : i32
    return %c0_i32, %c0_i32_0 : i32, i32
  }
  func.func @transform_7(%arg0: i32) -> (i32, i32) {
    %c0_i32 = arith.constant 0 : i32
    %c0_i32_0 = arith.constant 0 : i32
    return %c0_i32, %arg0 : i32, i32
  }
}

</mosaic_0001>

<bundles_post_ra>
// kernel: tpu_custom_call.1
= control target key start
LH: loop header
LB: loop body
LE: loop exit
PB: predicated region body
PF: predicated region fallthrough
CT: control target
= control target key end

     0   :  { %s2126_s0 = inlined_call_operand.vmem [shape: f32[384,20], index: 0, kind: input, shape index: {}]   ;;  %s2127_s1 = inlined_call_operand.vmem [shape: bf16[20,128], index: 1, kind: input, shape index: {}]   ;;  %s2128_s2 = inlined_call_operand.vmem [shape: f32[1,64], index: 2, kind: input, shape index: {}]   ;;  %s2129_s3 = inlined_call_operand.vmem [shape: bf16[64,64], index: 3, kind: input, shape index: {}]   ;;  %s2130_s4 = inlined_call_operand.vmem [shape: f32[1,64], index: 4, kind: input, shape index: {}]   ;;  %s2131_s5 = inlined_call_operand.vmem [shape: bf16[1,64], index: 5, kind: input, shape index: {}]   ;;  %s2132_s6 = inlined_call_operand.<no memory space> [shape: f32[1,1], index: 6, kind: input, shape index: {}]   ;;  %s2133_s7 = inlined_call_operand.hbm [shape: f32[1,384], index: 7, kind: output, shape index: {}]  }
   0x1   :  { %v12_v0 = vstv %s2132_s6 }
   0x2   :  { %13 = vst [vmem:[#allocation2] sm:$0x1] %v12_v0 }
   0x3   :  { %14 = vsyncpa [#allocation4], 0 }
   0x4   :  { %16 = vsyncpa [#allocation4 + $0x1], 0  ;;  %s1686_s26 = smov 0   ;;  %s1688_s27 = smov 0  }
   0x5   :  { %s1690_s28 = smov 0   ;;  %s1692_s29 = smov 0  }
   0x6 LB: > { %s1707_s6 = sadd.s32 4294967295, %s1637_s29   ;;  %s1330_s30 = sadd.s32 4294967294, %s1637_s29   ;;  %s1637_s29 = sphi %s1692_s29, %s2139_s29   ;;  %s1633_s28 = sphi %s1690_s28, %s2138_s28   ;;  %s1629_s27 = sphi %s1688_s27, %s2137_s27   ;;  %s1625_s26 = sphi %s1686_s26, %s2136_s26  }
   0x7   : > { %s1711_s8 = sadd.s32 1, %s1637_s29   ;;  %s181_s9 = sadd.s32 1, %s1633_s28 }
   0x8   : > { %s178_s10 = ssub.s32 %s1637_s29, %s1711_s8  ;;  %p191_p0 = scmp.ne.s32.totalorder %s1633_s28, %s1629_s27 }
   0x9   : > { %p179_p1 = scmp.eq.s32.totalorder %s178_s10, 0  ;;  %p192_p2 = scmp.eq.s32.totalorder %s1707_s6, 1 }
   0xa   : > { %p197_p3 = scmp.ne.s32.totalorder %s1629_s27, %s1625_s26  ;;  %p198_p4 = scmp.eq.s32.totalorder %s1330_s30, 1 }
   0xb   : > { %s1722_s11 = scalar_select %p179_p1, %s1633_s28, %s181_s9  }
   0xc   : > { %p1724_p5 = por %p192_p2, %p191_p0  ;;  %p1728_p6 = por %p198_p4, %p197_p3 }
   0xd   : > { %p1333_p7 = scmp.ge.s32.totalorder %s1637_s29, 1  ;;  %p251_p8 = scmp.lt.s32.totalorder %s1637_s29, 3 }
   0xf   : > { %p252_p9 = pnand %p1333_p7, %p251_p8 }
  0x10   : > { %v1569_v1 = vld [vmem:[%s2127_s1] sm:$0xff] (!%p252_p9)   ;;  %vm416_vm0 = vcmask (!%p252_p9), 1041408   ;;  %v1570_v2 = vld [vmem:[%s2127_s1 + $0x8] ss:$0 sps:$4 sm:$0x33] (!%p252_p9)   ;;  %s1741_s18 = sshll.u32 (!%p252_p9), %s1707_s6, 5 }
  0x11   : > { %255 = sbr.rel (%p252_p9) target bundleno = 822 (0x336), region = 48  ;;  %1442 = vmatprep.subr.bf16.mxu0 (!%p252_p9), %v1569_v1  ;;  %p292_p10 = scmp.lt.s32.totalorder (!%p252_p9), %s1741_s18, 47  ;;  %v418_v3 = vsel (!%p252_p9), %vm416_vm0, %v1570_v2, 0  ;;  %v1571_v4 = vld [vmem:[%s2129_s3] sm:$0xff] (!%p252_p9)   ;;  %v1572_v5 = vld [vmem:[%s2129_s3 + $0x8] sm:$0xff] (!%p252_p9)   ;;  %vm367_vm1 = vcmask (!%p252_p9), 162816  }
  0x12   : > { %1443 = vmatpush3.bf16.msra.mxu0 (!%p252_p9), %v1569_v1  ;;  %1478 = vmatprep.subr.bf16.mxu1 (!%p252_p9), %v1571_v4  ;;  %v1573_v54 = vld [vmem:[%s2129_s3 + $0x10] sm:$0xff] (!%p252_p9)   ;;  %v1574_v55 = vld [vmem:[%s2129_s3 + $0x18] sm:$0xff] (!%p252_p9)   ;;  %v1813_v56 = vld [vmem:[%s2128_s2] ss:$0 sm:$0xff] (!%p252_p9)  ;;  %s1639_s20 = smov (!%p252_p9), 64   ;;  %vm828_vm2 = vcmask (!%p252_p9), 523264  }
  0x13   : > { %1518 = vmatprep.subr.msk.bf16.mxu0 (!%p252_p9), %vm416_vm0, %v1570_v2  ;;  %1479 = vmatpush3.bf16.msra.mxu1 (!%p252_p9), %v1571_v4  ;;  %s284_s25 = sand.u32 (!%p252_p9), 1, %s1629_s27  }
  0x14   : > { %1480 = vmatprep.subr.bf16.mxu1 (!%p252_p9), %v1572_v5  ;;  %s1334_s30 = sshll.u32 (!%p252_p9), %s284_s25, 1  ;;  %s2072_s10 = scalar_lea.sflag (!%p252_p9), [#allocation4], %s284_s25 }
  0x16   : > { %1445 = vmatpush3.bf16.msra.mxu0 (!%p252_p9), %v418_v3 }
  0x17   : > { %1481 = vmatpush3.bf16.msra.mxu1 (!%p252_p9), %v1572_v5 }
  0x18   : > { %s293_s21 = scalar_select %p292_p10, %s1741_s18, 47  ;;  %1482 = vmatprep.subr.bf16.mxu1 %v1573_v54 }
  0x19   : > { %s1379_s14 = sshll.u32 (%p1724_p5), %s1707_s6, 1 }
  0x1a   : > { %s1336_s24 = sshll.u32 %s293_s21, 3  ;;  %s1260_s15 = ssub.s32 (%p1724_p5), 3, %s1379_s14 }
  0x1b   : > { %s1754_s9 = scalar_lea.vmem %s2126_s0, %s1336_s24  ;;  %1483 = vmatpush3.bf16.msra.mxu1 %v1573_v54  ;;  %p1261_p11 = scmp.lt.s32.totalorder (%p1724_p5), %s1260_s15, 2 }
  0x1c   : > { %v307_v6 = vld [vmem:[%s1754_s9] sm:$0xff]  ;;  %v308_v7 = vld [vmem:[%s1754_s9 + $0x8] sm:$0xff]  ;;  %v309_v8 = vld [vmem:[%s1754_s9 + $0x10] sm:$0xff]  ;;  %1484 = vmatprep.subr.bf16.mxu1 %v1574_v55 }
  0x1d   : > { %v339_v9 = vpack.c.bf16 %v308_v7, %v307_v6  ;;  %v310_v10 = vld [vmem:[%s1754_s9 + $0x18] sm:$0xff]  ;;  %v311_v11 = vld [vmem:[%s1754_s9 + $0x20] sm:$0xff]  ;;  %v312_v12 = vld [vmem:[%s1754_s9 + $0x28] sm:$0xff] }
  0x1e   : > { %v340_v13 = vpack.c.bf16 %v310_v10, %v309_v8  ;;  %v341_v14 = vpack.c.bf16 %v312_v12, %v311_v11  ;;  %v313_v15 = vld [vmem:[%s1754_s9 + $0x30] sm:$0xff]  ;;  %v314_v16 = vld [vmem:[%s1754_s9 + $0x38] sm:$0xff]  ;;  %v315_v17 = vld [vmem:[%s1754_s9 + $0x40] sm:$0xff] }
  0x1f   : > { %1446 = vmatprep.mubr.msk.bf16.mxu0 %vm367_vm1, %v339_v9  ;;  %v316_v18 = vld [vmem:[%s1754_s9 + $0x48] sm:$0xff]  ;;  %v342_v19 = vpack.c.bf16 %v314_v16, %v313_v15  ;;  %v317_v21 = vld [vmem:[%s1754_s9 + $0x50] sm:$0xff]  ;;  %v318_v22 = vld [vmem:[%s1754_s9 + $0x58] sm:$0xff]  ;;  %1485 = vmatpush3.bf16.msra.mxu1 %v1574_v55 }
  0x20   : > { %1447 = vmatmul.mubr.msk.bf16.vlgmr.msra.gmra.mrb[0].mxu0 %vm367_vm1, %v340_v13  ;;  %v343_v20 = vpack.c.bf16 %v316_v18, %v315_v17  ;;  %v319_v23 = vld [vmem:[%s1754_s9 + $0x60] sm:$0xff]  ;;  %v320_v24 = vld [vmem:[%s1754_s9 + $0x68] sm:$0xff]  ;;  %v344_v25 = vpack.c.bf16 %v318_v22, %v317_v21  ;;  %v321_v27 = vld [vmem:[%s1754_s9 + $0x70] sm:$0xff] }
  0x21   : > { %1450 = vmatprep.mubr.msk.bf16.mxu0 %vm367_vm1, %v341_v14  ;;  %v345_v26 = vpack.c.bf16 %v320_v24, %v319_v23  ;;  %v322_v28 = vld [vmem:[%s1754_s9 + $0x78] sm:$0xff]  ;;  %v323_v29 = vld [vmem:[%s1754_s9 + $0x80] sm:$0xff]  ;;  %v324_v30 = vld [vmem:[%s1754_s9 + $0x88] sm:$0xff] }
  0x22   : > { %v346_v31 = vpack.c.bf16 %v322_v28, %v321_v27  ;;  %v347_v32 = vpack.c.bf16 %v324_v30, %v323_v29  ;;  %v325_v33 = vld [vmem:[%s1754_s9 + $0x90] sm:$0xff]  ;;  %v326_v34 = vld [vmem:[%s1754_s9 + $0x98] sm:$0xff]  ;;  %v327_v35 = vld [vmem:[%s1754_s9 + $0xa0] sm:$0xff] }
  0x23   : > { %v328_v36 = vld [vmem:[%s1754_s9 + $0xa8] sm:$0xff]  ;;  %v348_v37 = vpack.c.bf16 %v326_v34, %v325_v33  ;;  %v329_v39 = vld [vmem:[%s1754_s9 + $0xb0] sm:$0xff]  ;;  %v330_v40 = vld [vmem:[%s1754_s9 + $0xb8] sm:$0xff] }
  0x24   : > { %v349_v38 = vpack.c.bf16 %v328_v36, %v327_v35  ;;  %v331_v41 = vld [vmem:[%s1754_s9 + $0xc0] sm:$0xff]  ;;  %v332_v42 = vld [vmem:[%s1754_s9 + $0xc8] sm:$0xff]  ;;  %v350_v43 = vpack.c.bf16 %v330_v40, %v329_v39  ;;  %v333_v45 = vld [vmem:[%s1754_s9 + $0xd0] sm:$0xff] }
  0x25   : > { %v351_v44 = vpack.c.bf16 %v332_v42, %v331_v41  ;;  %v334_v46 = vld [vmem:[%s1754_s9 + $0xd8] sm:$0xff]  ;;  %v335_v47 = vld [vmem:[%s1754_s9 + $0xe0] sm:$0xff]  ;;  %v336_v48 = vld [vmem:[%s1754_s9 + $0xe8] sm:$0xff] }
  0x26   : > { %v352_v49 = vpack.c.bf16 %v334_v46, %v333_v45  ;;  %v353_v50 = vpack.c.bf16 %v336_v48, %v335_v47  ;;  %v337_v51 = vld [vmem:[%s1754_s9 + $0xf0] sm:$0xff]  ;;  %v338_v52 = vld [vmem:[%s1754_s9 + $0xf8] sm:$0xff]  ;;  %s286_s9 = scalar_lea.vmem [#allocation3], %s1334_s30 }
  0x27   : > { %v354_v53 = vpack.c.bf16 %v338_v52, %v337_v51 }
  0x28   : > { %1451 = vmatmul.mubr.msk.bf16.gmra.mrb[4].mxu0 %vm367_vm1, %v342_v19 }
  0x29   : > { %1454 = vmatprep.mubr.msk.bf16.mxu0 %vm367_vm1, %v343_v20 }
  0x30   : > { %1455 = vmatmul.mubr.msk.bf16.gmra.mrb[8].mxu0 %vm367_vm1, %v344_v25 }
  0x31   : > { %1458 = vmatprep.mubr.msk.bf16.mxu0 %vm367_vm1, %v345_v26 }
  0x38   : > { %1459 = vmatmul.mubr.msk.bf16.gmra.mrb[12].mxu0 %vm367_vm1, %v346_v31 }
  0x39   : > { %1462 = vmatprep.mubr.msk.bf16.mxu0 %vm367_vm1, %v347_v32 }
  0x40   : > { %1463 = vmatmul.mubr.msk.bf16.gmra.mrb[16].mxu0 %vm367_vm1, %v348_v37 }
  0x41   : > { %1466 = vmatprep.mubr.msk.bf16.mxu0 %vm367_vm1, %v349_v38 }
  0x48   : > { %1467 = vmatmul.mubr.msk.bf16.gmra.mrb[20].mxu0 %vm367_vm1, %v350_v43 }
  0x49   : > { %1470 = vmatprep.mubr.msk.bf16.mxu0 %vm367_vm1, %v351_v44 }
  0x50   : > { %1471 = vmatmul.mubr.msk.bf16.gmra.mrb[24].mxu0 %vm367_vm1, %v352_v49 }
  0x51   : > { %1474 = vmatprep.mubr.msk.bf16.mxu0 %vm367_vm1, %v353_v50 }
  0x58   : > { %1475 = vmatmul.mubr.msk.bf16.gmra.mrb[28].mxu0 %vm367_vm1, %v354_v53 }
  0xf3   : > { %v1448_v57 = vpop.f32.mrb[0].mxu0 }
  0xf4   : > { %v590_v58 = vadd.f32 %v1448_v57, %v1813_v56  ;;  %v454_v59 = vpop.f32.mrb[1].mxu0 }
  0xf5   : > { %v588_v60 = vadd.f32 %v1813_v56, %v454_v59  ;;  %732 = vrot.lane.b32.xlu0 %v454_v59, %s1639_s20  ;;  %v1818_v61 = vpop.f32.mrb[2].mxu0 }
  0xf6   : > { %v591_v62 = vadd.f32 %v1818_v61, %v1813_v56  ;;  %v457_v63 = vpop.f32.mrb[3].mxu0  ;;  %v622_v1 = vmax.f32 %v590_v58, 0.0 }
  0xf7   : > { %v589_v0 = vadd.f32 %v1813_v56, %v457_v63  ;;  %v620_v3 = vmax.f32 %v588_v60, 0.0 }
  0xf8   : > { %v623_v2 = vmax.f32 %v591_v62, 0.0 }
  0xf9   : > { %v621_v4 = vmax.f32 %v589_v0, 0.0  ;;  %734 = vrot.lane.b32.xlu0 %v457_v63, %s1639_s20 }
  0xfa   : > { %v653_v5 = vpack.c.bf16 %v623_v2, %v622_v1 }
  0xfb   : > { %v1824_v6 = vpop.f32.mrb[4].mxu0  ;;  %v652_v7 = vpack.c.bf16 %v621_v4, %v620_v3 }
  0xfc   : > { %v594_v8 = vadd.f32 %v1824_v6, %v1813_v56  ;;  %v470_v9 = vpop.f32.mrb[5].mxu0 }
  0xfd   : > { %v592_v10 = vadd.f32 %v1813_v56, %v470_v9  ;;  %736 = vrot.lane.b32.xlu0 %v1448_v57, %s1639_s20  ;;  %v1830_v11 = vpop.f32.mrb[6].mxu0  ;;  %1486 = vmatprep.mubr.msk.bf16.mxu1 %vm828_vm2, %v652_v7 }
  0xfe   : > { %v595_v12 = vadd.f32 %v1830_v11, %v1813_v56  ;;  %v1835_v13 = vpop.f32.mrb[7].mxu0  ;;  %1487 = vmatmul.mubr.msk.bf16.vlgmr.msra.gmra.mrb[0].mxu1 %vm828_vm2, %v653_v5  ;;  %v626_v15 = vmax.f32 %v594_v8, 0.0 }
  0xff   : > { %v593_v14 = vadd.f32 %v1813_v56, %v1835_v13  ;;  %v624_v17 = vmax.f32 %v592_v10, 0.0 }
 0x100   : > { %v627_v16 = vmax.f32 %v595_v12, 0.0 }
 0x101   : > { %v625_v18 = vmax.f32 %v593_v14, 0.0 }
 0x102   : > { %v655_v19 = vpack.c.bf16 %v627_v16, %v626_v15 }
 0x103   : > { %v654_v20 = vpack.c.bf16 %v625_v18, %v624_v17  ;;  %v1840_v21 = vpop.f32.mrb[8].mxu0 }
 0x104   : > { %v598_v22 = vadd.f32 %v1840_v21, %v1813_v56  ;;  %v1844_v23 = vpop.f32.mrb[9].mxu0 }
 0x105   : > { %v596_v24 = vadd.f32 %v1813_v56, %v1844_v23  ;;  %v1848_v25 = vpop.f32.mrb[10].mxu0  ;;  %1490 = vmatprep.mubr.msk.bf16.mxu1 %vm828_vm2, %v654_v20 }
 0x106   : > { %v599_v26 = vadd.f32 %v1848_v25, %v1813_v56  ;;  %v1853_v27 = vpop.f32.mrb[11].mxu0  ;;  %1491 = vmatmul.mubr.msk.bf16.gmra.mrb[4].mxu1 %vm828_vm2, %v655_v19  ;;  %v630_v29 = vmax.f32 %v598_v22, 0.0 }
 0x107   : > { %v597_v28 = vadd.f32 %v1813_v56, %v1853_v27  ;;  %v628_v31 = vmax.f32 %v596_v24, 0.0 }
 0x108   : > { %v631_v30 = vmax.f32 %v599_v26, 0.0 }
 0x109   : > { %v629_v32 = vmax.f32 %v597_v28, 0.0 }
 0x10a   : > { %v657_v33 = vpack.c.bf16 %v631_v30, %v630_v29 }
 0x10b   : > { %v656_v34 = vpack.c.bf16 %v629_v32, %v628_v31  ;;  %v1858_v35 = vpop.f32.mrb[12].mxu0 }
 0x10c   : > { %v602_v36 = vadd.f32 %v1858_v35, %v1813_v56  ;;  %v1862_v37 = vpop.f32.mrb[13].mxu0 }
 0x10d   : > { %v600_v38 = vadd.f32 %v1813_v56, %v1862_v37  ;;  %v1866_v39 = vpop.f32.mrb[14].mxu0  ;;  %1494 = vmatprep.mubr.msk.bf16.mxu1 %vm828_vm2, %v656_v34 }
 0x10e   : > { %v603_v40 = vadd.f32 %v1866_v39, %v1813_v56  ;;  %v1871_v41 = vpop.f32.mrb[15].mxu0  ;;  %1495 = vmatmul.mubr.msk.bf16.gmra.mrb[8].mxu1 %vm828_vm2, %v657_v33  ;;  %v634_v43 = vmax.f32 %v602_v36, 0.0 }
 0x10f   : > { %v601_v42 = vadd.f32 %v1813_v56, %v1871_v41  ;;  %v632_v45 = vmax.f32 %v600_v38, 0.0 }
 0x110   : > { %v635_v44 = vmax.f32 %v603_v40, 0.0 }
 0x111   : > { %v633_v46 = vmax.f32 %v601_v42, 0.0 }
 0x112   : > { %v659_v47 = vpack.c.bf16 %v635_v44, %v634_v43 }
 0x113   : > { %v658_v48 = vpack.c.bf16 %v633_v46, %v632_v45  ;;  %v1464_v49 = vpop.f32.mrb[16].mxu0 }
 0x114   : > { %v606_v50 = vadd.f32 %v1464_v49, %v1813_v56  ;;  %768 = vrot.lane.b32.xlu0 %v1464_v49, %s1639_s20  ;;  %v518_v51 = vpop.f32.mrb[17].mxu0 }
 0x115   : > { %v604_v52 = vadd.f32 %v1813_v56, %v518_v51  ;;  %1498 = vmatprep.mubr.msk.bf16.mxu1 %vm828_vm2, %v658_v48  ;;  %764 = vrot.lane.b32.xlu1 %v518_v51, %s1639_s20  ;;  %v1465_v53 = vpop.f32.mrb[18].mxu0 }
 0x116   : > { %v607_v54 = vadd.f32 %v1465_v53, %v1813_v56  ;;  %v521_v55 = vpop.f32.mrb[19].mxu0  ;;  %1499 = vmatmul.mubr.msk.bf16.gmra.mrb[12].mxu1 %vm828_vm2, %v659_v47  ;;  %v638_v58 = vmax.f32 %v606_v50, 0.0 }
 0x117   : > { %v605_v57 = vadd.f32 %v1813_v56, %v521_v55  ;;  %v636_v60 = vmax.f32 %v604_v52, 0.0 }
 0x118   : > { %v639_v59 = vmax.f32 %v607_v54, 0.0  ;;  %740 = vrot.lane.b32.xlu0 %v470_v9, %s1639_s20 }
 0x119   : > { %v637_v62 = vmax.f32 %v605_v57, 0.0  ;;  %766 = vrot.lane.b32.xlu1 %v521_v55, %s1639_s20  ;;  %v1126_v57 = vld [vmem:[#allocation2] sm:$0x1] }
 0x11a   : > { %v661_v63 = vpack.c.bf16 %v639_v59, %v638_v58  ;;  %v1640_v58 = vmov 0  }
 0x11b   : > { %v660_v0 = vpack.c.bf16 %v637_v62, %v636_v60  ;;  %v1468_v1 = vpop.f32.mrb[20].mxu0  ;;  %1568 = vset.pattern.permute.xlu0 %v1640_v58 }
 0x11c   : > { %v610_v2 = vadd.f32 %v1468_v1, %v1813_v56  ;;  %v534_v3 = vpop.f32.mrb[21].mxu0 }
 0x11d   : > { %v608_v4 = vadd.f32 %v1813_v56, %v534_v3  ;;  %738 = vrot.lane.b32.xlu1 %v1818_v61, %s1639_s20  ;;  %1502 = vmatprep.mubr.msk.bf16.mxu1 %vm828_vm2, %v660_v0  ;;  %v1469_v5 = vpop.f32.mrb[22].mxu0 }
 0x11e   : > { %v642_v7 = vmax.f32 %v610_v2, 0.0  ;;  %772 = vrot.lane.b32.xlu0 %v534_v3, %s1639_s20  ;;  %v611_v8 = vadd.f32 %v1469_v5, %v1813_v56  ;;  %v537_v9 = vpop.f32.mrb[23].mxu0  ;;  %1503 = vmatmul.mubr.msk.bf16.gmra.mrb[16].mxu1 %vm828_vm2, %v661_v63 }
 0x11f   : > { %v640_v10 = vmax.f32 %v608_v4, 0.0  ;;  %v609_v12 = vadd.f32 %v1813_v56, %v537_v9  ;;  %v1973_v4 = vld [vmem:[%s2130_s4] ss:$0 sm:$0xff] }
 0x120   : > { %v643_v14 = vmax.f32 %v611_v8, 0.0 }
 0x121   : > { %v641_v15 = vmax.f32 %v609_v12, 0.0  ;;  %770 = vrot.lane.b32.xlu1 %v1465_v53, %s1639_s20 }
 0x122   : > { %v663_v16 = vpack.c.bf16 %v643_v14, %v642_v7  ;;  %744 = vrot.lane.b32.xlu0 %v1824_v6, %s1639_s20 }
 0x123   : > { %v662_v61 = vpack.c.bf16 %v641_v15, %v640_v10  ;;  %v1472_v17 = vpop.f32.mrb[24].mxu0 }
 0x124   : > { %v614_v18 = vadd.f32 %v1472_v17, %v1813_v56  ;;  %v550_v19 = vpop.f32.mrb[25].mxu0 }
 0x125   : > { %v612_v20 = vadd.f32 %v1813_v56, %v550_v19  ;;  %742 = vrot.lane.b32.xlu1 %v1835_v13, %s1639_s20  ;;  %v1473_v22 = vpop.f32.mrb[26].mxu0  ;;  %1506 = vmatprep.mubr.msk.bf16.mxu1 %vm828_vm2, %v662_v61 }
 0x126   : > { %v646_v24 = vmax.f32 %v614_v18, 0.0  ;;  %776 = vrot.lane.b32.xlu0 %v1468_v1, %s1639_s20  ;;  %v615_v26 = vadd.f32 %v1473_v22, %v1813_v56  ;;  %v553_v28 = vpop.f32.mrb[27].mxu0  ;;  %1507 = vmatmul.mubr.msk.bf16.gmra.mrb[20].mxu1 %vm828_vm2, %v663_v16 }
 0x127   : > { %v644_v6 = vmax.f32 %v612_v20, 0.0  ;;  %v613_v29 = vadd.f32 %v1813_v56, %v553_v28 }
 0x128   : > { %v647_v30 = vmax.f32 %v615_v26, 0.0 }
 0x129   : > { %v645_v31 = vmax.f32 %v613_v29, 0.0  ;;  %774 = vrot.lane.b32.xlu1 %v537_v9, %s1639_s20 }
 0x12a   : > { %v665_v32 = vpack.c.bf16 %v647_v30, %v646_v24  ;;  %748 = vrot.lane.b32.xlu0 %v1844_v23, %s1639_s20 }
 0x12b   : > { %v664_v13 = vpack.c.bf16 %v645_v31, %v644_v6  ;;  %v1476_v33 = vpop.f32.mrb[28].mxu0 }
 0x12c   : > { %v618_v34 = vadd.f32 %v1476_v33, %v1813_v56  ;;  %v566_v36 = vpop.f32.mrb[29].mxu0 }
 0x12d   : > { %v616_v38 = vadd.f32 %v1813_v56, %v566_v36  ;;  %746 = vrot.lane.b32.xlu1 %v1830_v11, %s1639_s20  ;;  %v1477_v40 = vpop.f32.mrb[30].mxu0  ;;  %1510 = vmatprep.mubr.msk.bf16.mxu1 %vm828_vm2, %v664_v13 }
 0x12e   : > { %v650_v42 = vmax.f32 %v618_v34, 0.0  ;;  %780 = vrot.lane.b32.xlu0 %v550_v19, %s1639_s20  ;;  %v619_v43 = vadd.f32 %v1477_v40, %v1813_v56  ;;  %v569_v44 = vpop.f32.mrb[31].mxu0  ;;  %1511 = vmatmul.mubr.msk.bf16.gmra.mrb[24].mxu1 %vm828_vm2, %v665_v32 }
 0x12f   : > { %v648_v23 = vmax.f32 %v616_v38, 0.0  ;;  %v617_v45 = vadd.f32 %v1813_v56, %v569_v44 }
 0x130   : > { %v651_v46 = vmax.f32 %v619_v43, 0.0 }
 0x131   : > { %v649_v47 = vmax.f32 %v617_v45, 0.0  ;;  %778 = vrot.lane.b32.xlu1 %v1469_v5, %s1639_s20 }
 0x132   : > { %v667_v48 = vpack.c.bf16 %v651_v46, %v650_v42  ;;  %752 = vrot.lane.b32.xlu0 %v1840_v21, %s1639_s20 }
 0x133   : > { %v666_v11 = vpack.c.bf16 %v649_v47, %v648_v23 }
 0x135   : > { %750 = vrot.lane.b32.xlu1 %v1853_v27, %s1639_s20  ;;  %1514 = vmatprep.mubr.msk.bf16.mxu1 %vm828_vm2, %v666_v11 }
 0x136   : > { %784 = vrot.lane.b32.xlu0 %v1472_v17, %s1639_s20  ;;  %1515 = vmatmul.mubr.msk.bf16.gmra.mrb[28].mxu1 %vm828_vm2, %v667_v48 }
 0x139   : > { %782 = vrot.lane.b32.xlu1 %v553_v28, %s1639_s20 }
 0x13a   : > { %756 = vrot.lane.b32.xlu0 %v1862_v37, %s1639_s20 }
 0x13d   : > { %754 = vrot.lane.b32.xlu1 %v1848_v25, %s1639_s20 }
 0x13e   : > { %788 = vrot.lane.b32.xlu0 %v566_v36, %s1639_s20 }
 0x141   : > { %786 = vrot.lane.b32.xlu1 %v1473_v22, %s1639_s20 }
 0x142   : > { %760 = vrot.lane.b32.xlu0 %v1858_v35, %s1639_s20 }
 0x145   : > { %758 = vrot.lane.b32.xlu1 %v1871_v41, %s1639_s20 }
 0x146   : > { %792 = vrot.lane.b32.xlu0 %v1476_v33, %s1639_s20 }
 0x149   : > { %790 = vrot.lane.b32.xlu1 %v569_v44, %s1639_s20 }
 0x14a   : > { %1129 = vperm.xlu0 %1568, %v1126_v57  }
 0x14d   : > { %762 = vrot.lane.b32.xlu1 %v1866_v39, %s1639_s20  ;;  %v1958_v39 = vld [vmem:[%s2131_s5] sm:$0x1] }
 0x14e   : > { %1440 = vmatprep.mubr.msk.bf16.mxu0 %vm828_vm2, %v1958_v39 }
 0x151   : > { %794 = vrot.lane.b32.xlu1 %v1477_v40, %s1639_s20 }
 0x167   : > { %v733_v56 = vpop.permute.xlu0 %732 }
 0x16b   : > { %v735_v25 = vpop.permute.xlu0 %734 }
 0x16f   : > { %v737_v37 = vpop.permute.xlu0 %736 }
 0x186   : > { %v1947_v49 = vpop.permute.xlu0 %768 }
 0x187   : > { %v1943_v21 = vpop.permute.xlu1 %764 }
 0x18a   : > { %v741_v50 = vpop.permute.xlu0 %740 }
 0x18b   : > { %v1945_v27 = vpop.permute.xlu1 %766 }
 0x18f   : > { %v739_v35 = vpop.permute.xlu1 %738 }
 0x190   : > { %v1951_v52 = vpop.permute.xlu0 %772 }
 0x193   : > { %v1949_v41 = vpop.permute.xlu1 %770 }
 0x194   : > { %v745_v54 = vpop.permute.xlu0 %744 }
 0x197   : > { %v743_v51 = vpop.permute.xlu1 %742 }
 0x198   : > { %v1962_v59 = vpop.permute.xlu0 %776 }
 0x19b   : > { %v1953_v53 = vpop.permute.xlu1 %774 }
 0x19c   : > { %v749_v62 = vpop.permute.xlu0 %748 }
 0x19f   : > { %v747_v55 = vpop.permute.xlu1 %746 }
 0x1a0   : > { %v1966_v0 = vpop.permute.xlu0 %780 }
 0x1a3   : > { %v1964_v60 = vpop.permute.xlu1 %778 }
 0x1a4   : > { %v753_v2 = vpop.permute.xlu0 %752 }
 0x1a7   : > { %v751_v63 = vpop.permute.xlu1 %750 }
 0x1a8   : > { %v1978_v18 = vpop.permute.xlu0 %784 }
 0x1ab   : > { %v1968_v1 = vpop.permute.xlu1 %782 }
 0x1ac   : > { %v757_v40 = vpop.permute.xlu0 %756 }
 0x1af   : > { %v755_v8 = vpop.permute.xlu1 %754 }
 0x1b3   : > { %v1981_v24 = vpop.permute.xlu1 %786 }
 0x1b7   : > { %v759_v23 = vpop.permute.xlu1 %758 }
 0x1d1   : > { %v1488_v3 = vpop.f32.mrb[0].mxu1 }
 0x1d2   : > { %v920_v5 = vadd.f32 %v1488_v3, %v737_v37  ;;  %v911_v7 = vpop.f32.mrb[1].mxu1 }
 0x1d3   : > { %v912_v9 = vadd.f32 %v911_v7, %v733_v56  ;;  %v1489_v10 = vpop.f32.mrb[2].mxu1 }
 0x1d4   : > { %v1047_v12 = vadd.f32 %v1973_v4, %v920_v5  ;;  %v923_v14 = vadd.f32 %v1489_v10, %v739_v35  ;;  %v914_v15 = vpop.f32.mrb[3].mxu1  ;;  %v1998_v5 = vpop.permute.xlu1 %790 }
 0x1d5   : > { %v1045_v16 = vadd.f32 %v1973_v4, %v912_v9  ;;  %v915_v61 = vadd.f32 %v914_v15, %v735_v25 }
 0x1d6   : > { %v1048_v17 = vadd.f32 %v1973_v4, %v923_v14  ;;  %v1079_v20 = vmax.f32 %v1047_v12, 0.0 }
 0x1d7   : > { %v1046_v19 = vadd.f32 %v1973_v4, %v915_v61  ;;  %v1077_v26 = vmax.f32 %v1045_v16, 0.0 }
 0x1d8   : > { %v1080_v22 = vmax.f32 %v1048_v17, 0.0 }
 0x1d9   : > { %v1078_v28 = vmax.f32 %v1046_v19, 0.0  ;;  %v1492_v6 = vpop.f32.mrb[4].mxu1 }
 0x1da   : > { %v1983_v29 = vpack.c.bf16 %v1080_v22, %v1079_v20  ;;  %v936_v30 = vadd.f32 %v1492_v6, %v745_v54  ;;  %v927_v31 = vpop.f32.mrb[5].mxu1  ;;  %v763_v20 = vpop.permute.xlu1 %762 }
 0x1db   : > { %v1985_v32 = vpack.c.bf16 %v1078_v28, %v1077_v26  ;;  %v928_v13 = vadd.f32 %v927_v31, %v741_v50  ;;  %v1493_v33 = vpop.f32.mrb[6].mxu1  ;;  %v1993_v50 = vpop.permute.xlu0 %788 }
 0x1dc   : > { %v1051_v34 = vadd.f32 %v1973_v4, %v936_v30  ;;  %v939_v36 = vadd.f32 %v1493_v33, %v747_v55  ;;  %v930_v38 = vpop.f32.mrb[7].mxu1 }
 0x1dd   : > { %v1049_v42 = vadd.f32 %v1973_v4, %v928_v13  ;;  %v931_v43 = vadd.f32 %v930_v38, %v743_v51 }
 0x1de   : > { %v1052_v44 = vadd.f32 %v1973_v4, %v939_v36  ;;  %v1083_v46 = vmax.f32 %v1051_v34, 0.0 }
 0x1df   : > { %v1050_v45 = vadd.f32 %v1973_v4, %v931_v43  ;;  %v1081_v48 = vmax.f32 %v1049_v42, 0.0  ;;  %v761_v15 = vpop.permute.xlu0 %760 }
 0x1e0   : > { %v1084_v47 = vmax.f32 %v1052_v44, 0.0 }
 0x1e1   : > { %v1082_v11 = vmax.f32 %v1050_v45, 0.0  ;;  %v1496_v56 = vpop.f32.mrb[8].mxu1 }
 0x1e2   : > { %v1991_v25 = vpack.c.bf16 %v1084_v47, %v1083_v46  ;;  %v952_v37 = vadd.f32 %v1496_v56, %v753_v2  ;;  %v943_v35 = vpop.f32.mrb[9].mxu1 }
 0x1e3   : > { %v1995_v54 = vpack.c.bf16 %v1082_v11, %v1081_v48  ;;  %v944_v55 = vadd.f32 %v943_v35, %v749_v62  ;;  %v1497_v51 = vpop.f32.mrb[10].mxu1 }
 0x1e4   : > { %v1055_v57 = vadd.f32 %v1973_v4, %v952_v37  ;;  %v955_v58 = vadd.f32 %v1497_v51, %v755_v8  ;;  %v946_v3 = vpop.f32.mrb[11].mxu1 }
 0x1e5   : > { %v1053_v7 = vadd.f32 %v1973_v4, %v944_v55  ;;  %v947_v9 = vadd.f32 %v946_v3, %v751_v63 }
 0x1e6   : > { %v1056_v10 = vadd.f32 %v1973_v4, %v955_v58  ;;  %v1087_v12 = vmax.f32 %v1055_v57, 0.0 }
 0x1e7   : > { %v1054_v2 = vadd.f32 %v1973_v4, %v947_v9  ;;  %v1085_v16 = vmax.f32 %v1053_v7, 0.0 }
 0x1e8   : > { %v1088_v14 = vmax.f32 %v1056_v10, 0.0 }
 0x1e9   : > { %v1086_v61 = vmax.f32 %v1054_v2, 0.0  ;;  %v1500_v62 = vpop.f32.mrb[12].mxu1 }
 0x1ea   : > { %v2003_v17 = vpack.c.bf16 %v1088_v14, %v1087_v12  ;;  %v968_v19 = vadd.f32 %v1500_v62, %v761_v15  ;;  %v959_v8 = vpop.f32.mrb[13].mxu1 }
 0x1eb   : > { %v2005_v22 = vpack.c.bf16 %v1086_v61, %v1085_v16  ;;  %v960_v26 = vadd.f32 %v959_v8, %v757_v40  ;;  %v1501_v28 = vpop.f32.mrb[14].mxu1 }
 0x1ec   : > { %v1059_v63 = vadd.f32 %v1973_v4, %v968_v19  ;;  %v971_v6 = vadd.f32 %v1501_v28, %v763_v20  ;;  %v962_v30 = vpop.f32.mrb[15].mxu1  ;;  %v1140_v19 = vsel %vm828_vm2, %v1985_v32, 0 }
 0x1ed   : > { %v1057_v31 = vadd.f32 %v1973_v4, %v960_v26  ;;  %v963_v13 = vadd.f32 %v962_v30, %v759_v23 }
 0x1ee   : > { %v1060_v33 = vadd.f32 %v1973_v4, %v971_v6  ;;  %v1091_v36 = vmax.f32 %v1059_v63, 0.0 }
 0x1ef   : > { %v1058_v34 = vadd.f32 %v1973_v4, %v963_v13  ;;  %v1089_v42 = vmax.f32 %v1057_v31, 0.0 }
 0x1f0   : > { %v1092_v38 = vmax.f32 %v1060_v33, 0.0 }
 0x1f1   : > { %v1090_v43 = vmax.f32 %v1058_v34, 0.0  ;;  %v1504_v44 = vpop.f32.mrb[16].mxu1 }
 0x1f2   : > { %v2011_v45 = vpack.c.bf16 %v1092_v38, %v1091_v36  ;;  %v984_v40 = vadd.f32 %v1504_v44, %v1947_v49  ;;  %v975_v46 = vpop.f32.mrb[17].mxu1 }
 0x1f3   : > { %v2014_v47 = vpack.c.bf16 %v1090_v43, %v1089_v42  ;;  %v976_v48 = vadd.f32 %v975_v46, %v1943_v21  ;;  %v1505_v11 = vpop.f32.mrb[18].mxu1  ;;  %v1143_v42 = vsel %vm828_vm2, %v1983_v29, 0 }
 0x1f4   : > { %v1063_v23 = vadd.f32 %v1973_v4, %v984_v40  ;;  %v987_v56 = vadd.f32 %v1505_v11, %v1949_v41  ;;  %v978_v37 = vpop.f32.mrb[19].mxu1  ;;  %v793_v40 = vpop.permute.xlu0 %792 }
 0x1f5   : > { %v1061_v35 = vadd.f32 %v1973_v4, %v976_v48  ;;  %v979_v55 = vadd.f32 %v978_v37, %v1945_v27 }
 0x1f6   : > { %v1064_v51 = vadd.f32 %v1973_v4, %v987_v56  ;;  %v1095_v49 = vmax.f32 %v1063_v23, 0.0 }
 0x1f7   : > { %v1062_v57 = vadd.f32 %v1973_v4, %v979_v55  ;;  %v1093_v3 = vmax.f32 %v1061_v35, 0.0 }
 0x1f8   : > { %v1096_v58 = vmax.f32 %v1064_v51, 0.0 }
 0x1f9   : > { %v1094_v7 = vmax.f32 %v1062_v57, 0.0  ;;  %v1508_v9 = vpop.f32.mrb[20].mxu1 }
 0x1fa   : > { %v1119_v21 = vpack.c.bf16 %v1096_v58, %v1095_v49  ;;  %v1000_v10 = vadd.f32 %v1508_v9, %v1962_v59  ;;  %v991_v2 = vpop.f32.mrb[21].mxu1 }
 0x1fb   : > { %v1118_v12 = vpack.c.bf16 %v1094_v7, %v1093_v3  ;;  %v992_v41 = vadd.f32 %v991_v2, %v1951_v52  ;;  %v1509_v14 = vpop.f32.mrb[22].mxu1  ;;  %v1146_v3 = vsel %vm828_vm2, %v1995_v54, 0  ;;  %v1152_v54 = vsel %vm828_vm2, %v2005_v22, 0 }
 0x1fc   : > { %v1067_v15 = vadd.f32 %v1973_v4, %v1000_v10  ;;  %v1003_v27 = vadd.f32 %v1509_v14, %v1964_v60  ;;  %v994_v16 = vpop.f32.mrb[23].mxu1  ;;  %v1158_v14 = vsel %vm828_vm2, %v2014_v47, 0  ;;  %v1132_v22 = vlaneseq }
 0x1fd   : > { %v1065_v61 = vadd.f32 %v1973_v4, %v992_v41  ;;  %v995_v62 = vadd.f32 %v994_v16, %v1953_v53  ;;  %1519 = vmatprep.subr.msk.bf16.mxu0 %vm828_vm2, %v1118_v12  ;;  %v1641_v16 = vmov 1966171168  }
 0x1fe   : > { %v1068_v59 = vadd.f32 %v1973_v4, %v1003_v27  ;;  %1425 = vmatpush3.bf16.xpose.msra.mxu0 %v1140_v19  ;;  %v1099_v8 = vmax.f32 %v1067_v15, 0.0  ;;  %v1133_v15 = vshrl.u32 %v1132_v22, 7  ;;  %v1130_v27 = vpop.permute.xlu0 %1129  ;;  %vm1248_vm3 = vcmp.lt.s32.totalorder %v1132_v22, 256 }
 0x1ff   : > { %v1066_v52 = vadd.f32 %v1973_v4, %v995_v62  ;;  %1520 = vmatprep.subr.msk.bf16.mxu0 %vm828_vm2, %v1119_v21  ;;  %v1097_v60 = vmax.f32 %v1065_v61, 0.0  ;;  %v1232_v61 = vunpack.c.l.s4 %v1641_v16 }
 0x200   : > { %v1100_v20 = vmax.f32 %v1068_v59, 0.0 }
 0x201   : > { %v1098_v26 = vmax.f32 %v1066_v52, 0.0  ;;  %v1512_v28 = vpop.f32.mrb[24].mxu1  ;;  %v1233_v19 = vunpack.c.0.s8 %v1232_v61 }
 0x202   : > { %v1121_v63 = vpack.c.bf16 %v1100_v20, %v1099_v8  ;;  %v1016_v53 = vadd.f32 %v1512_v28, %v1978_v18  ;;  %v1007_v6 = vpop.f32.mrb[25].mxu1 }
 0x203   : > { %v1120_v30 = vpack.c.bf16 %v1098_v26, %v1097_v60  ;;  %v1008_v31 = vadd.f32 %v1007_v6, %v1966_v0  ;;  %v1513_v32 = vpop.f32.mrb[26].mxu1  ;;  %v1236_v20 = vsub.s32 %v1233_v19, %v1133_v15 }
 0x204   : > { %v1071_v13 = vadd.f32 %v1973_v4, %v1016_v53  ;;  %v1019_v33 = vadd.f32 %v1513_v32, %v1981_v24  ;;  %v1010_v34 = vpop.f32.mrb[27].mxu1 }
 0x205   : > { %v1069_v36 = vadd.f32 %v1973_v4, %v1008_v31  ;;  %v1011_v38 = vadd.f32 %v1010_v34, %v1968_v1  ;;  %v795_v1 = vpop.permute.xlu1 %794 }
 0x206   : > { %v1072_v43 = vadd.f32 %v1973_v4, %v1019_v33  ;;  %1427 = vmatpush3.bf16.xpose.msra.mxu0 %v1143_v42  ;;  %v1103_v0 = vmax.f32 %v1071_v13, 0.0 }
 0x207   : > { %v1070_v18 = vadd.f32 %v1973_v4, %v1011_v38  ;;  %1521 = vmatprep.subr.msk.bf16.mxu0 %vm828_vm2, %v1120_v30  ;;  %v1101_v46 = vmax.f32 %v1069_v36, 0.0 }
 0x208   : > { %v1104_v44 = vmax.f32 %v1072_v43, 0.0 }
 0x209   : > { %v1102_v24 = vmax.f32 %v1070_v18, 0.0  ;;  %v1516_v48 = vpop.f32.mrb[28].mxu1 }
 0x20a   : > { %v1123_v11 = vpack.c.bf16 %v1104_v44, %v1103_v0  ;;  %v1032_v23 = vadd.f32 %v1516_v48, %v793_v40  ;;  %v1023_v56 = vpop.f32.mrb[29].mxu1 }
 0x20b   : > { %v1122_v37 = vpack.c.bf16 %v1102_v24, %v1101_v46  ;;  %v1024_v29 = vadd.f32 %v1023_v56, %v1993_v50  ;;  %v1517_v35 = vpop.f32.mrb[30].mxu1 }
 0x20c   : > { %v1075_v55 = vadd.f32 %v1973_v4, %v1032_v23  ;;  %v1035_v51 = vadd.f32 %v1517_v35, %v795_v1  ;;  %v1026_v57 = vpop.f32.mrb[31].mxu1 }
 0x20d   : > { %v1073_v49 = vadd.f32 %v1973_v4, %v1024_v29  ;;  %v1027_v58 = vadd.f32 %v1026_v57, %v1998_v5  ;;  %v1149_v5 = vsel %vm828_vm2, %v1991_v25, 0  ;;  %v1161_v25 = vsel %vm828_vm2, %v2011_v45, 0 }
 0x20e   : > { %v1076_v7 = vadd.f32 %v1973_v4, %v1035_v51  ;;  %1429 = vmatpush3.bf16.xpose.msra.mxu0 %v1146_v3  ;;  %v1107_v50 = vmax.f32 %v1075_v55, 0.0 }
 0x20f   : > { %v1074_v9 = vadd.f32 %v1973_v4, %v1027_v58  ;;  %1522 = vmatprep.subr.msk.bf16.mxu0 %vm828_vm2, %v1121_v63  ;;  %v1105_v10 = vmax.f32 %v1073_v49, 0.0  ;;  %v1155_v4 = vsel %vm828_vm2, %v2003_v17, 0  ;;  %v1134_v17 = vsub.s32 0, %v1133_v15 }
 0x210   : > { %v1108_v21 = vmax.f32 %v1076_v7, 0.0 }
 0x211   : > { %v1106_v2 = vmax.f32 %v1074_v9, 0.0  ;;  %v1135_v62 = vrot.slane %v1130_v27, %v1134_v17 }
 0x212   : > { %v1125_v12 = vpack.c.bf16 %v1108_v21, %v1107_v50 }
 0x213   : > { %v1124_v41 = vpack.c.bf16 %v1106_v2, %v1105_v10 }
 0x216   : > { %1431 = vmatpush3.bf16.xpose.msra.mxu0 %v1149_v5 }
 0x217   : > { %1523 = vmatprep.subr.msk.bf16.mxu0 %vm828_vm2, %v1122_v37 }
 0x21e   : > { %1433 = vmatpush3.bf16.xpose.msra.mxu0 %v1152_v54 }
 0x21f   : > { %1524 = vmatprep.subr.msk.bf16.mxu0 %vm828_vm2, %v1123_v11 }
 0x226   : > { %1435 = vmatpush3.bf16.xpose.msra.mxu0 %v1155_v4 }
 0x227   : > { %1525 = vmatprep.subr.msk.bf16.mxu0 %vm828_vm2, %v1124_v41 }
 0x22e   : > { %1437 = vmatpush3.bf16.xpose.msra.mxu0 %v1158_v14 }
 0x22f   : > { %1526 = vmatprep.subr.msk.bf16.mxu0 %vm828_vm2, %v1125_v12 }
 0x236   : > { %1439 = vmatpush3.bf16.xpose.msra.mxu0 %v1161_v25 }
 0x23d   : > { %1441 = vmatmul.mubr.msk.bf16.vlgmr.msra.gmra.mrb[32].mxu0 %vm828_vm2, %v1958_v39 }
 0x310   : > { %v1221_v47 = vpop.f32.mrb[32].mxu0 }
 0x311   : > { %v1222_v59 = vadd.f32 %v1221_v47, %v1135_v62  ;;  %v1223_v52 = vpop.f32.mrb[33].mxu0 }
 0x312   : > { %v1224_v8 = vadd.f32 %v1223_v52, %v1135_v62  ;;  %v1225_v60 = vpop.f32.mrb[34].mxu0 }
 0x313   : > { %v1226_v45 = vpop.f32.mrb[35].mxu0 }
 0x314   : > { %v1230_v26 = vcombine.low %v1222_v59, %v1224_v8  ;;  %1258 = sbr.rel (!%p1724_p5) target bundleno = 822 (0x336), region = 52 }
 0x316   : > { %v1237_v28 = vrot.slane %v1230_v26, %v1236_v20 }
 0x318   : > { %v1244_v39 = vrot.slane %v1237_v28, %v1236_v20 }
 0x31a   : > { %1250 = vst.msk [vmem:[%s286_s9] sm:$0x3] %vm1248_vm3, %v1244_v39 }
 0x31b   : > { %s2141_s15 = smov (!%p1261_p11, %s1260_s15), 2 }
 0x31c   : > { %s2077_s16 = sshll.u32 %s2141_s15, 4 }
 0x31d   : > { %s1265_s17 = ssub.s32 32, %s2077_s16 }
 0x31e   : > { %1266 = vsyncadd %s2072_s10, %s1265_s17  ;;  %p1381_p12 = scmp.ne.s32.totalorder %s2077_s16, 0  ;;  %s2086_s12 = scalar_lea.hbm %s2133_s7, %s1741_s18 }
 0x31f   : > { %s1271_s21 = sshll.u32 %s286_s9, 4  ;;  %s1642_s22 = smov [#allocation3]   ;;  %s1272_s21 = int_to_ptr.vmem [resolvable:$true] %s1271_s21 }
 0x320   : > { %s1575_s6 = scalar_lea.vmem %s1272_s21, %s2077_s16  ;;  %s1579_s23 = sshll.u32 %s1642_s22, 4  ;;  %s1580_s23 = int_to_ptr.vmem [resolvable:$false] %s1579_s23 }
 0x321   : > { %p1576_p13 = scmp.ne.s32.totalorder %s1272_s21, %s1575_s6  ;;  %s1581_s24 = scalar_lea.vmem %s1580_s23, 64 }
 0x322   : > { %p1582_p2 = scmp.lt.s32.totalorder %s1272_s21, %s1580_s23  ;;  %p1583_p3 = scmp.lt.s32.totalorder %s1581_s24, %s1575_s6 }
 0x323   : > { %p1577_p0 = pnand %p1576_p13, %p1381_p12 }
 0x324   : > { %p1584_p4 = por %p1583_p3, %p1582_p2 }
 0x325   : > { %p1578_p1 = pneg %p1577_p0 }
 0x327   : > { %p1585_p5 = pnand %p1584_p4, %p1578_p1 }
 0x329   : > { %1588 = shalt.err (!%p1585_p5)
}
 0x32a   : > { %s1589_s18 = scalar_lea.hbm %s2086_s12, %s2077_s16  ;;  %s1593_s9 = scalar_lea.hbm %s2133_s7, 48 }
 0x32b   : > { %p1590_p7 = scmp.ne.s32.totalorder %s2086_s12, %s1589_s18  ;;  %p1594_p10 = scmp.lt.u32.totalorder %s2086_s12, %s2133_s7 }
 0x32c   : > { %p1595_p11 = scmp.lt.u32.totalorder %s1593_s9, %s1589_s18  ;;  %p1597_p0 = scmp.lt.u32.totalorder %s1589_s18, %s2086_s12 }
 0x32d   : > { %p1591_p8 = pnand %p1590_p7, %p1381_p12 }
 0x32e   : > { %p1596_p13 = por %p1595_p11, %p1594_p10 }
 0x32f   : > { %p1592_p9 = pneg %p1591_p8 }
 0x330   : > { %p1598_p1 = por %p1597_p0, %p1596_p13 }
 0x332   : > { %p1599_p2 = pnand %p1598_p1, %p1592_p9 }
 0x334   : > { %1602 = shalt.err (!%p1599_p2)
}
 0x335   : > { %1274 = dma.vmem_to_hbm [thread:$0]  (%p1381_p12), %s1272_s21, %s2077_s16, %s2086_s12, %s2072_s10  }
 0x336 PF: > { %p1532_p3 = scmp.ge.s32.totalorder %s1637_s29, 2  ;;  %s1283_s17 = sand.u32 1, %s1625_s26  }
 0x337   : > { %s1284_s19 = scalar_lea.sflag [#allocation4], %s1283_s17 }
 0x338   : > { %p1529_p4 = pnand %p1532_p3, %p1728_p6 }
 0x33a   : > { %1620 = dma.done.wait (!%p1529_p4), %s1284_s19, 32  }
 0x33b   : > { %1622 = vsyncadd (!%p1529_p4), %s1284_s19, 4294967264  ;;  %p19_p5 = scmp.ge.s32.totalorder %s1711_s8, 4   ;;  %s2136_s26 = smov %s1629_s27 }
 0x33c   : > { %s2137_s27 = smov %s1633_s28  ;;  %s2138_s28 = smov %s1722_s11 }
 0x33d   : > { %s2139_s29 = smov %s1711_s8  ;;  %21 = sbr.rel (!%p19_p5) target bundleno = 6 (0x6), region = 83 }
 0x344   :  { %1289 = vsyncpa [#allocation4], 1 }
 0x345   :  { %1291 = vsyncpa [#allocation4 + $0x1], 1 }

</bundles_post_ra>
